<compile_context>
chip_gen: v6e
topology: v6e:2x2x1
jax: 0.10.0
libtpu: 0.0.40
codegen_flags: <defaults>
</compile_context>

<pallas_src>
import functools

import jax
import jax.numpy as jnp
from jax.experimental import pallas as pl
from jax.experimental.pallas import tpu as pltpu


def _resblock_kernel(num_mid, lo, nl, xe_ref, xo_ref, w_sc_ref, b_sc_ref, *args):
    """One grid step: a block of batch elements, deinterleaved into even/odd phases.

    xe_ref/xo_ref: (C_in, nl) where nl = B*Lo; even phase holds times 2j, odd 2j+1.
    Mid conv weights arrive pre-fused as (F, 3*C_prev); biases as (F, 1).
    """
    mid_refs = args[: 2 * num_mid]
    wx_ref, bx_ref, out_ref = args[2 * num_mid:]

    # Hoisted boundary masks: computed once, reused by every conv layer.
    # j_local = position within one batch element's half-length axis; masking at the
    # per-element boundaries also kills any cross-batch leakage from the circular rolls.
    j_local = jax.lax.broadcasted_iota(jnp.int32, (1, nl), 1) % lo
    mask_first = j_local >= 1          # zero 'same'-padding for x[t-1] at t == 0
    mask_last = j_local <= lo - 2      # zero 'same'-padding for x[t+1] at t == L-1

    def conv3(even, odd, w_ref, b_ref):
        # even[:, j] = time 2j, odd[:, j] = time 2j+1 (per batch element).
        odd_prev = jnp.where(mask_first, pltpu.roll(odd, 1, axis=1), 0.0)         # time 2j-1
        even_next = jnp.where(mask_last, pltpu.roll(even, nl - 1, axis=1), 0.0)   # time 2j+2
        # Fused taps: one matmul per phase, K = 3*C_prev (weights pre-concatenated
        # in the wrapper as [w_tap0 | w_tap1 | w_tap2]).
        stack_e = jnp.concatenate([odd_prev, even, odd], axis=0)    # taps (t-1, t, t+1) for even outputs
        stack_o = jnp.concatenate([even, odd, even_next], axis=0)   # taps (t-1, t, t+1) for odd outputs
        w = w_ref[...]
        b = b_ref[...]
        ye = jnp.dot(w, stack_e, preferred_element_type=jnp.float32) + b
        yo = jnp.dot(w, stack_o, preferred_element_type=jnp.float32) + b
        return ye, yo

    he = xe_ref[...].astype(jnp.float32)
    ho = xo_ref[...].astype(jnp.float32)

    for i in range(num_mid):                            # conv3 + ReLU stack
        ye, yo = conv3(he, ho, mid_refs[2 * i], mid_refs[2 * i + 1])
        he = jnp.maximum(ye, 0.0)
        ho = jnp.maximum(yo, 0.0)

    ye, yo = conv3(he, ho, wx_ref, bx_ref)              # final kernel-3 conv (no ReLU yet)

    # Shortcut (kernel-1 conv == pure channel matmul), computed right before the
    # residual add so its (F, nl) result has the shortest possible live range.
    w_sc = w_sc_ref[...]
    b_sc = b_sc_ref[...]
    se = jnp.dot(w_sc, xe_ref[...].astype(jnp.float32), preferred_element_type=jnp.float32) + b_sc
    so = jnp.dot(w_sc, xo_ref[...].astype(jnp.float32), preferred_element_type=jnp.float32) + b_sc

    he = jnp.maximum(ye + se, 0.0)                      # residual add + ReLU
    ho = jnp.maximum(yo + so, 0.0)

    # MaxPool1d(kernel=2, stride=2): the pooled pairs are exactly (even, odd) phases.
    out_ref[...] = jnp.maximum(he, ho).astype(out_ref.dtype)


def speaknet_resblock(x, params):
    N, c_in, L = x.shape
    assert L % 2 == 0, "MaxPool1d(2,2) path assumes an even sequence length"
    filters = params["w_sc"].shape[0]
    num_mid = len(params["mid"])
    Lo = L // 2

    # --- glue: repack parameters into kernel-friendly, tap-fused layouts (once) ---
    def cat3(w):  # (C_out, C_in, 3) -> (C_out, 3*C_in): taps concatenated on K
        return jnp.concatenate([w[:, :, 0], w[:, :, 1], w[:, :, 2]], axis=1)

    w_sc = params["w_sc"][:, :, 0]                      # (F, C_in)
    b_sc = params["b_sc"].reshape(filters, 1)
    mid = []
    for (w, b) in params["mid"]:
        mid.append(cat3(w))
        mid.append(b.reshape(filters, 1))
    wx = cat3(params["wx"])
    bx = params["bx"].reshape(filters, 1)
    # Note: weights/activations are kept f32 (tight numerics; v5e has no bf16 VPU).
    # Casting the matmul operands to bf16 is a v6e/v7x-only follow-up once MXU-bound.

    # --- glue: deinterleave time into even/odd phases, fold batch into lanes ---
    # (N, C, L) -> (C, N*Lo) per phase: channels on sublanes, batch*half-length on lanes.
    def phase(p):
        return jnp.transpose(x[:, :, p::2], (1, 0, 2)).reshape(c_in, N * Lo)

    xe, xo = phase(0), phase(1)

    # Per-step batch block: one batch element per grid step when the lane axis stays
    # 128-aligned (keeps pipelining + megacore sharding across v7x's 2 TCs); otherwise
    # fold the whole batch into a single lane-dense step (full-extent block is legal).
    if N > 1 and Lo % 128 == 0:
        B = 1
    else:
        B = N
    grid = (N // B,)
    blk = B * Lo
    # For very long L, an L-tile grid axis with a (num_mid + 1)-column halo would keep
    # the per-step working set under v7x's 64 MiB VMEM; not needed at these sizes.

    def full(a):
        nd = a.ndim
        return pl.BlockSpec(a.shape, lambda n, nd=nd: (0,) * nd)

    in_specs = [pl.BlockSpec((c_in, blk), lambda n: (0, n)),
                pl.BlockSpec((c_in, blk), lambda n: (0, n)),
                full(w_sc), full(b_sc)]
    in_specs += [full(a) for a in mid]
    in_specs += [full(wx), full(bx)]
    out_spec = pl.BlockSpec((filters, blk), lambda n: (0, n))

    kernel = functools.partial(_resblock_kernel, num_mid, Lo, blk)
    pooled = pl.pallas_call(
        kernel,
        out_shape=jax.ShapeDtypeStruct((filters, N * Lo), x.dtype),
        grid=grid,
        in_specs=in_specs,
        out_specs=out_spec,
        compiler_params=pltpu.CompilerParams(dimension_semantics=("parallel",)),
    )(xe, xo, w_sc, b_sc, *mid, wx, bx)

    # (F, N*Lo) -> (N, F, Lo)
    return jnp.transpose(pooled.reshape(filters, N, Lo), (1, 0, 2))


def init_params(key, c_in, filters, conv_num):
    """Deterministic synthetic init (PyTorch-style uniform(-1/sqrt(fan_in), ...))."""
    ks = jax.random.split(key, 2 * (conv_num + 1))

    def uinit(k, shape, fan_in):
        bound = 1.0 / jnp.sqrt(jnp.float32(fan_in))
        return jax.random.uniform(k, shape, jnp.float32, -bound, bound)

    params = {}
    params["w_sc"] = uinit(ks[0], (filters, c_in, 1), c_in * 1)
    params["b_sc"] = uinit(ks[1], (filters,), c_in * 1)
    mid = []
    prev = c_in
    for i in range(conv_num - 1):
        w = uinit(ks[2 + 2 * i], (filters, prev, 3), prev * 3)
        b = uinit(ks[3 + 2 * i], (filters,), prev * 3)
        mid.append((w, b))
        prev = filters
    params["mid"] = mid
    params["wx"] = uinit(ks[2 * conv_num], (filters, prev, 3), prev * 3)
    params["bx"] = uinit(ks[2 * conv_num + 1], (filters,), prev * 3)
    return params


def reference_forward(x, params):
    """Plain-JAX reference mirroring the PyTorch forward."""
    def conv1d(h, w, b, pad):
        y = jax.lax.conv_general_dilated(
            h, w, window_strides=(1,), padding=[(pad, pad)],
            dimension_numbers=("NCH", "OIH", "NCH"))
        return y + b[None, :, None]

    s = conv1d(x, params["w_sc"], params["b_sc"], 0)
    h = x
    for (w, b) in params["mid"]:
        h = jax.nn.relu(conv1d(h, w, b, 1))
    h = conv1d(h, params["wx"], params["bx"], 1)
    h = jax.nn.relu(h + s)
    N, C, L = h.shape
    return h.reshape(N, C, L // 2, 2).max(axis=3)


if __name__ == "__main__":
    N, C_IN, L = 2, 4, 16
    FILTERS, CONV_NUM = 8, 2

    key = jax.random.PRNGKey(0)
    k_x, k_p = jax.random.split(key)
    x = jax.random.normal(k_x, (N, C_IN, L), dtype=jnp.float32)
    params = init_params(k_p, C_IN, FILTERS, CONV_NUM)

    out = speaknet_resblock(x, params)
    out = jax.block_until_ready(out)

    ref = jax.block_until_ready(reference_forward(x, params))
    assert out.shape == (N, FILTERS, L // 2)
    assert jnp.allclose(out, ref, rtol=1e-5, atol=1e-5)

    print("KERNEL_OK")
</pallas_src>

<mosaic_0001>
module attributes {stable_mosaic.version = 11 : i64} {
  func.func @_resblock_kernel(%arg0: i32, %arg1: memref<4x16xf32, #tpu.memory_space<vmem>>, %arg2: memref<4x16xf32, #tpu.memory_space<vmem>>, %arg3: memref<8x4xf32, #tpu.memory_space<vmem>>, %arg4: memref<8x1xf32, #tpu.memory_space<vmem>>, %arg5: memref<8x12xf32, #tpu.memory_space<vmem>>, %arg6: memref<8x1xf32, #tpu.memory_space<vmem>>, %arg7: memref<8x24xf32, #tpu.memory_space<vmem>>, %arg8: memref<8x1xf32, #tpu.memory_space<vmem>>, %arg9: memref<8x16xf32, #tpu.memory_space<vmem>>) attributes {dimension_semantics = [#tpu.dimension_semantics<parallel>], iteration_bounds = array<i64: 1>, scalar_prefetch = 0 : i64, scratch_operands = 0 : i64, tpu.core_type = #tpu.core_type<tc>, window_params = [{transform_indices = @transform_0, window_bounds = array<i64: 4, 16>}, {transform_indices = @transform_1, window_bounds = array<i64: 4, 16>}, {pipeline_mode = #tpu.pipeline_mode<synchronous>, transform_indices = @transform_2, window_bounds = array<i64: 8, 4>}, {pipeline_mode = #tpu.pipeline_mode<synchronous>, transform_indices = @transform_3, window_bounds = array<i64: 8, 1>}, {pipeline_mode = #tpu.pipeline_mode<synchronous>, transform_indices = @transform_4, window_bounds = array<i64: 8, 12>}, {pipeline_mode = #tpu.pipeline_mode<synchronous>, transform_indices = @transform_5, window_bounds = array<i64: 8, 1>}, {pipeline_mode = #tpu.pipeline_mode<synchronous>, transform_indices = @transform_6, window_bounds = array<i64: 8, 24>}, {pipeline_mode = #tpu.pipeline_mode<synchronous>, transform_indices = @transform_7, window_bounds = array<i64: 8, 1>}, {transform_indices = @transform_8, window_bounds = array<i64: 8, 16>}]} {
    %0 = tpu.iota {dimensions = array<i32: 1>} : vector<1x16xi32>
    %c8_i32 = arith.constant 8 : i32
    %c0_i32 = arith.constant 0 : i32
    %1 = arith.cmpi eq, %c8_i32, %c0_i32 : i32
    %c1_i32 = arith.constant 1 : i32
    %2 = arith.select %1, %c1_i32, %c8_i32 : i32
    %3 = vector.broadcast %2 : i32 to vector<1x16xi32>
    %4 = arith.remsi %0, %3 : vector<1x16xi32>
    %c0_i32_0 = arith.constant 0 : i32
    %5 = vector.broadcast %c0_i32_0 : i32 to vector<1x16xi32>
    %6 = arith.cmpi ne, %4, %5 : vector<1x16xi32>
    %c0_i32_1 = arith.constant 0 : i32
    %7 = vector.broadcast %c0_i32_1 : i32 to vector<1x16xi32>
    %8 = arith.cmpi slt, %4, %7 : vector<1x16xi32>
    %c0_i32_2 = arith.constant 0 : i32
    %9 = arith.cmpi slt, %2, %c0_i32_2 : i32
    %10 = vector.broadcast %9 : i1 to vector<1x16xi1>
    %11 = vector.broadcast %10 : vector<1x16xi1> to vector<1x16xi1>
    %12 = arith.xori %8, %11 : vector<1x16xi1>
    %13 = arith.andi %12, %6 : vector<1x16xi1>
    %14 = vector.broadcast %2 : i32 to vector<1x16xi32>
    %15 = arith.addi %4, %14 : vector<1x16xi32>
    %16 = arith.select %13, %15, %4 : vector<1x16xi1>, vector<1x16xi32>
    %c1_i32_3 = arith.constant 1 : i32
    %17 = vector.broadcast %c1_i32_3 : i32 to vector<1x16xi32>
    %18 = arith.cmpi sge, %16, %17 : vector<1x16xi32>
    %c6_i32 = arith.constant 6 : i32
    %19 = vector.broadcast %c6_i32 : i32 to vector<1x16xi32>
    %20 = arith.cmpi sle, %16, %19 : vector<1x16xi32>
    %c0 = arith.constant 0 : index
    %c0_4 = arith.constant 0 : index
    %21 = vector.load %arg1[%c0, %c0_4] : memref<4x16xf32, #tpu.memory_space<vmem>>, vector<4x16xf32>
    %c0_5 = arith.constant 0 : index
    %c0_6 = arith.constant 0 : index
    %22 = vector.load %arg2[%c0_5, %c0_6] : memref<4x16xf32, #tpu.memory_space<vmem>>, vector<4x16xf32>
    %c1_i32_7 = arith.constant 1 : i32
    %23 = tpu.dynamic_rotate %22 by %c1_i32_7 dim 1 : vector<4x16xf32>, i32 -> vector<4x16xf32>
    %cst = arith.constant 0.000000e+00 : f32
    %24 = vector.shape_cast %18 : vector<1x16xi1> to vector<1x16xi1>
    %25 = vector.broadcast %24 : vector<1x16xi1> to vector<4x16xi1>
    %26 = vector.broadcast %cst : f32 to vector<4x16xf32>
    %27 = arith.select %25, %23, %26 : vector<4x16xi1>, vector<4x16xf32>
    %c15_i32 = arith.constant 15 : i32
    %28 = tpu.dynamic_rotate %21 by %c15_i32 dim 1 : vector<4x16xf32>, i32 -> vector<4x16xf32>
    %cst_8 = arith.constant 0.000000e+00 : f32
    %29 = vector.shape_cast %20 : vector<1x16xi1> to vector<1x16xi1>
    %30 = vector.broadcast %29 : vector<1x16xi1> to vector<4x16xi1>
    %31 = vector.broadcast %cst_8 : f32 to vector<4x16xf32>
    %32 = arith.select %30, %28, %31 : vector<4x16xi1>, vector<4x16xf32>
    %33 = tpu.concatenate %27, %21, %22 in 0 : vector<4x16xf32>, vector<4x16xf32>, vector<4x16xf32> -> vector<12x16xf32>
    %34 = tpu.concatenate %21, %22, %32 in 0 : vector<4x16xf32>, vector<4x16xf32>, vector<4x16xf32> -> vector<12x16xf32>
    %c0_9 = arith.constant 0 : index
    %c0_10 = arith.constant 0 : index
    %35 = vector.load %arg5[%c0_9, %c0_10] : memref<8x12xf32, #tpu.memory_space<vmem>>, vector<8x12xf32>
    %c0_11 = arith.constant 0 : index
    %c0_12 = arith.constant 0 : index
    %36 = vector.load %arg6[%c0_11, %c0_12] : memref<8x1xf32, #tpu.memory_space<vmem>>, vector<8x1xf32>
    %cst_13 = arith.constant dense<0.000000e+00> : vector<8x16xf32>
    %37 = tpu.matmul %35, %33, %cst_13 {dimension_numbers = #tpu.dot_dimension_numbers<[1], [0], [0], [1], [0, 0, 1, 1], [], []>} : vector<8x12xf32>, vector<12x16xf32>, vector<8x16xf32> -> vector<8x16xf32>
    %38 = vector.broadcast %36 : vector<8x1xf32> to vector<8x16xf32>
    %39 = arith.addf %37, %38 : vector<8x16xf32>
    %cst_14 = arith.constant dense<0.000000e+00> : vector<8x16xf32>
    %40 = tpu.matmul %35, %34, %cst_14 {dimension_numbers = #tpu.dot_dimension_numbers<[1], [0], [0], [1], [0, 0, 1, 1], [], []>} : vector<8x12xf32>, vector<12x16xf32>, vector<8x16xf32> -> vector<8x16xf32>
    %41 = vector.broadcast %36 : vector<8x1xf32> to vector<8x16xf32>
    %42 = arith.addf %40, %41 : vector<8x16xf32>
    %cst_15 = arith.constant 0.000000e+00 : f32
    %43 = vector.broadcast %cst_15 : f32 to vector<8x16xf32>
    %44 = arith.maximumf %39, %43 : vector<8x16xf32>
    %cst_16 = arith.constant 0.000000e+00 : f32
    %45 = vector.broadcast %cst_16 : f32 to vector<8x16xf32>
    %46 = arith.maximumf %42, %45 : vector<8x16xf32>
    %c1_i32_17 = arith.constant 1 : i32
    %47 = tpu.dynamic_rotate %46 by %c1_i32_17 dim 1 : vector<8x16xf32>, i32 -> vector<8x16xf32>
    %cst_18 = arith.constant 0.000000e+00 : f32
    %48 = vector.shape_cast %18 : vector<1x16xi1> to vector<1x16xi1>
    %49 = vector.broadcast %48 : vector<1x16xi1> to vector<8x16xi1>
    %50 = vector.broadcast %cst_18 : f32 to vector<8x16xf32>
    %51 = arith.select %49, %47, %50 : vector<8x16xi1>, vector<8x16xf32>
    %c15_i32_19 = arith.constant 15 : i32
    %52 = tpu.dynamic_rotate %44 by %c15_i32_19 dim 1 : vector<8x16xf32>, i32 -> vector<8x16xf32>
    %cst_20 = arith.constant 0.000000e+00 : f32
    %53 = vector.shape_cast %20 : vector<1x16xi1> to vector<1x16xi1>
    %54 = vector.broadcast %53 : vector<1x16xi1> to vector<8x16xi1>
    %55 = vector.broadcast %cst_20 : f32 to vector<8x16xf32>
    %56 = arith.select %54, %52, %55 : vector<8x16xi1>, vector<8x16xf32>
    %57 = tpu.concatenate %51, %44, %46 in 0 : vector<8x16xf32>, vector<8x16xf32>, vector<8x16xf32> -> vector<24x16xf32>
    %58 = tpu.concatenate %44, %46, %56 in 0 : vector<8x16xf32>, vector<8x16xf32>, vector<8x16xf32> -> vector<24x16xf32>
    %c0_21 = arith.constant 0 : index
    %c0_22 = arith.constant 0 : index
    %59 = vector.load %arg7[%c0_21, %c0_22] : memref<8x24xf32, #tpu.memory_space<vmem>>, vector<8x24xf32>
    %c0_23 = arith.constant 0 : index
    %c0_24 = arith.constant 0 : index
    %60 = vector.load %arg8[%c0_23, %c0_24] : memref<8x1xf32, #tpu.memory_space<vmem>>, vector<8x1xf32>
    %cst_25 = arith.constant dense<0.000000e+00> : vector<8x16xf32>
    %61 = tpu.matmul %59, %57, %cst_25 {dimension_numbers = #tpu.dot_dimension_numbers<[1], [0], [0], [1], [0, 0, 1, 1], [], []>} : vector<8x24xf32>, vector<24x16xf32>, vector<8x16xf32> -> vector<8x16xf32>
    %62 = vector.broadcast %60 : vector<8x1xf32> to vector<8x16xf32>
    %63 = arith.addf %61, %62 : vector<8x16xf32>
    %cst_26 = arith.constant dense<0.000000e+00> : vector<8x16xf32>
    %64 = tpu.matmul %59, %58, %cst_26 {dimension_numbers = #tpu.dot_dimension_numbers<[1], [0], [0], [1], [0, 0, 1, 1], [], []>} : vector<8x24xf32>, vector<24x16xf32>, vector<8x16xf32> -> vector<8x16xf32>
    %65 = vector.broadcast %60 : vector<8x1xf32> to vector<8x16xf32>
    %66 = arith.addf %64, %65 : vector<8x16xf32>
    %c0_27 = arith.constant 0 : index
    %c0_28 = arith.constant 0 : index
    %67 = vector.load %arg3[%c0_27, %c0_28] : memref<8x4xf32, #tpu.memory_space<vmem>>, vector<8x4xf32>
    %c0_29 = arith.constant 0 : index
    %c0_30 = arith.constant 0 : index
    %68 = vector.load %arg4[%c0_29, %c0_30] : memref<8x1xf32, #tpu.memory_space<vmem>>, vector<8x1xf32>
    %c0_31 = arith.constant 0 : index
    %c0_32 = arith.constant 0 : index
    %69 = vector.load %arg1[%c0_31, %c0_32] : memref<4x16xf32, #tpu.memory_space<vmem>>, vector<4x16xf32>
    %cst_33 = arith.constant dense<0.000000e+00> : vector<8x16xf32>
    %70 = tpu.matmul %67, %69, %cst_33 {dimension_numbers = #tpu.dot_dimension_numbers<[1], [0], [0], [1], [0, 0, 1, 1], [], []>} : vector<8x4xf32>, vector<4x16xf32>, vector<8x16xf32> -> vector<8x16xf32>
    %71 = vector.broadcast %68 : vector<8x1xf32> to vector<8x16xf32>
    %72 = arith.addf %70, %71 : vector<8x16xf32>
    %c0_34 = arith.constant 0 : index
    %c0_35 = arith.constant 0 : index
    %73 = vector.load %arg2[%c0_34, %c0_35] : memref<4x16xf32, #tpu.memory_space<vmem>>, vector<4x16xf32>
    %cst_36 = arith.constant dense<0.000000e+00> : vector<8x16xf32>
    %74 = tpu.matmul %67, %73, %cst_36 {dimension_numbers = #tpu.dot_dimension_numbers<[1], [0], [0], [1], [0, 0, 1, 1], [], []>} : vector<8x4xf32>, vector<4x16xf32>, vector<8x16xf32> -> vector<8x16xf32>
    %75 = vector.broadcast %68 : vector<8x1xf32> to vector<8x16xf32>
    %76 = arith.addf %74, %75 : vector<8x16xf32>
    %77 = arith.addf %63, %72 : vector<8x16xf32>
    %cst_37 = arith.constant 0.000000e+00 : f32
    %78 = vector.broadcast %cst_37 : f32 to vector<8x16xf32>
    %79 = arith.maximumf %77, %78 : vector<8x16xf32>
    %80 = arith.addf %66, %76 : vector<8x16xf32>
    %cst_38 = arith.constant 0.000000e+00 : f32
    %81 = vector.broadcast %cst_38 : f32 to vector<8x16xf32>
    %82 = arith.maximumf %80, %81 : vector<8x16xf32>
    %83 = arith.maximumf %79, %82 : vector<8x16xf32>
    %c0_39 = arith.constant 0 : index
    %c0_40 = arith.constant 0 : index
    %84 = vector.load %arg9[%c0_39, %c0_40] : memref<8x16xf32, #tpu.memory_space<vmem>>, vector<8x16xf32>
    tpu.vector_store %arg9[%c0_39, %c0_40], %83 {strides = array<i32>} : memref<8x16xf32, #tpu.memory_space<vmem>>, vector<8x16xf32>,
    return
  }
  func.func @transform_0(%arg0: i32) -> (i32, i32) {
    %c0_i32 = arith.constant 0 : i32
    %c0_i32_0 = arith.constant 0 : i32
    return %c0_i32, %arg0 : i32, i32
  }
  func.func @transform_1(%arg0: i32) -> (i32, i32) {
    %c0_i32 = arith.constant 0 : i32
    %c0_i32_0 = arith.constant 0 : i32
    return %c0_i32, %arg0 : i32, i32
  }
  func.func @transform_2(%arg0: i32) -> (i32, i32) {
    %c0_i32 = arith.constant 0 : i32
    %c0_i32_0 = arith.constant 0 : i32
    %c0_i32_1 = arith.constant 0 : i32
    return %c0_i32, %c0_i32_0 : i32, i32
  }
  func.func @transform_3(%arg0: i32) -> (i32, i32) {
    %c0_i32 = arith.constant 0 : i32
    %c0_i32_0 = arith.constant 0 : i32
    %c0_i32_1 = arith.constant 0 : i32
    return %c0_i32, %c0_i32_0 : i32, i32
  }
  func.func @transform_4(%arg0: i32) -> (i32, i32) {
    %c0_i32 = arith.constant 0 : i32
    %c0_i32_0 = arith.constant 0 : i32
    %c0_i32_1 = arith.constant 0 : i32
    return %c0_i32, %c0_i32_0 : i32, i32
  }
  func.func @transform_5(%arg0: i32) -> (i32, i32) {
    %c0_i32 = arith.constant 0 : i32
    %c0_i32_0 = arith.constant 0 : i32
    %c0_i32_1 = arith.constant 0 : i32
    return %c0_i32, %c0_i32_0 : i32, i32
  }
  func.func @transform_6(%arg0: i32) -> (i32, i32) {
    %c0_i32 = arith.constant 0 : i32
    %c0_i32_0 = arith.constant 0 : i32
    %c0_i32_1 = arith.constant 0 : i32
    return %c0_i32, %c0_i32_0 : i32, i32
  }
  func.func @transform_7(%arg0: i32) -> (i32, i32) {
    %c0_i32 = arith.constant 0 : i32
    %c0_i32_0 = arith.constant 0 : i32
    %c0_i32_1 = arith.constant 0 : i32
    return %c0_i32, %c0_i32_0 : i32, i32
  }
  func.func @transform_8(%arg0: i32) -> (i32, i32) {
    %c0_i32 = arith.constant 0 : i32
    %c0_i32_0 = arith.constant 0 : i32
    return %c0_i32, %arg0 : i32, i32
  }
}

</mosaic_0001>

<bundles_post_ra>
// kernel: tpu_custom_call.1
= control target key start
LH: loop header
LB: loop body
LE: loop exit
PB: predicated region body
PF: predicated region fallthrough
CT: control target
= control target key end

     0   :  { %s692_s29 = smov 16   ;;  %s853_s0 = inlined_call_operand.vmem [shape: f32[4,16], index: 0, kind: input, shape index: {}]   ;;  %s854_s1 = inlined_call_operand.vmem [shape: f32[4,16], index: 1, kind: input, shape index: {}]   ;;  %s855_s2 = inlined_call_operand.vmem [shape: f32[8,4], index: 2, kind: input, shape index: {}]   ;;  %s856_s3 = inlined_call_operand.vmem [shape: f32[8,1], index: 3, kind: input, shape index: {}]   ;;  %s857_s4 = inlined_call_operand.vmem [shape: f32[8,12], index: 4, kind: input, shape index: {}]   ;;  %s858_s5 = inlined_call_operand.vmem [shape: f32[8,1], index: 5, kind: input, shape index: {}]   ;;  %s859_s6 = inlined_call_operand.vmem [shape: f32[8,24], index: 6, kind: input, shape index: {}]   ;;  %s860_s7 = inlined_call_operand.vmem [shape: f32[8,1], index: 7, kind: input, shape index: {}]   ;;  %s861_s8 = inlined_call_operand.hbm [shape: f32[8,16], index: 8, kind: output, shape index: {}]  }
   0x1   :  { %v747_v0 = vld [vmem:[%s854_s1] sm:$0xf] }
   0x2   :  { %49 = vrot.lane.b32.xlu0 %v747_v0, %s692_s29 }
   0x3   :  { %13 = vsyncpa [#allocation3], 0  ;;  %v754_v1 = vld [vmem:[%s853_s0] sm:$0xf]  ;;  %v693_v2 = vmov 0.0   ;;  %vm48_vm0 = vcmask 1047680   ;;  %v30_v13 = vlaneseq }
   0x4   :  { %619 = vmatprep.subr.mxu0 %v693_v2  ;;  %626 = vmatprep.subr.mxu1 %v693_v2  ;;  %vm78_vm1 = vcmask 1043456   ;;  %vm694_vm2 = vmmov 0   ;;  %v695_v7 = vmov 0   ;;  %s696_s0 = smov 113   ;;  %v85_v10 = vld [vmem:[%s858_s5] sm:$0xff]  ;;  %s697_s11 = smov 127  }
   0x5   :  { %620 = vmatpush3.msk.msra.mxu0 %vm78_vm1, %v747_v0  ;;  %623 = vmatprep.mubr.msk.f32.mxu0 %vm694_vm2, %v693_v2  ;;  %v31_v14 = vand.u32 127, %v30_v13  ;;  %v76_v17 = vrot.slane %v754_v1, 4  ;;  %v84_v20 = vld [vmem:[%s857_s4] sm:$0xff]  ;;  %vm91_vm4 = vcmask 97280   ;;  %v81_v21 = vrot.slane %v747_v0, 4 }
   0x6   :  { %62 = vrot.lane.b32.xlu0 %v754_v1, %s692_s29  ;;  %621 = vmatprep.subr.mxu0 %v693_v2  ;;  %v265_v42 = vld [vmem:[%s860_s7] sm:$0xff]  ;;  %vm271_vm6 = vcmask 195584   ;;  %vm422_vm7 = vcmask 31744   ;;  %vm573_vm8 = vcmask 130048  }
   0x7   :  { %630 = vmatprep.mubr.msk.f32.mxu1 %vm694_vm2, %v693_v2  ;;  %668 = vset.pattern.permute.xlu0 %v695_v7  ;;  %v36_v15 = vand.u32 7, %v31_v14  ;;  %v83_v26 = vsel %vm78_vm1, %v754_v1, %v81_v21  ;;  %v416_v45 = vld [vmem:[%s856_s3] sm:$0xff] }
   0x8   :  { %669 = vset.pattern.permute.xlu1 %v695_v7  ;;  %v264_v47 = vld [vmem:[%s859_s6] sm:$0xff] }
   0x9   :  { %vm782_vm3 = vcmp.ge.s32.totalorder %v36_v15, 1  ;;  %vm794_vm5 = vcmp.le.s32.totalorder %v36_v15, 6  ;;  %v415_v49 = vld [vmem:[%s855_s2] sm:$0xff]  ;;  %s698_s2 = smov [#allocation2]  }
   0xa   :  { %s581_s6 = sshll.u32 %s698_s2, 4  ;;  %s582_s6 = int_to_ptr.vmem [resolvable:$true] %s581_s6 }
   0xb   :  { %s670_s18 = scalar_lea.vmem %s582_s6, 128  ;;  %p675_p1 = scmp.lt.s32.totalorder %s582_s6, %s582_s6 }
   0xc   :  { %p671_p0 = scmp.ne.s32.totalorder %s582_s6, %s670_s18  ;;  %p676_p2 = scmp.lt.s32.totalorder %s670_s18, %s670_s18 }
   0xe   :  { %p677_p3 = por %p676_p2, %p675_p1 }
  0x10   :  { %p678_p4 = pnand %p677_p3, %p671_p0 }
  0x74   :  { %v50_v3 = vpop.permute.xlu0 %49 }
  0x75   :  { %v51_v4 = vsel %vm48_vm0, %v50_v3, %v747_v0 }
  0x76   :  { %52 = vrot.lane.b32.xlu1 %v51_v4, %s692_s29 }
  0x78   :  { %v63_v5 = vpop.permute.xlu0 %62 }
  0x79   :  { %v64_v6 = vsel %vm48_vm0, %v63_v5, %v754_v1 }
  0x7a   :  { %65 = vrot.lane.b32.xlu1 %v64_v6, %s692_s29 }
  0xe8   :  { %v53_v8 = vpop.permute.xlu1 %52 }
  0xe9   :  { %v54_v9 = vsel %vm48_vm0, %v53_v8, %v747_v0 }
  0xea   :  { %58 = vrot.lane.b32.xlu0 %v54_v9, %s696_s0 }
  0xec   :  { %v66_v11 = vpop.permute.xlu1 %65 }
  0xed   :  { %v67_v12 = vsel %vm48_vm0, %v66_v11, %v754_v1 }
  0xee   :  { %71 = vrot.lane.b32.xlu1 %v67_v12, %s697_s11  ;;  %88 = vperm.xlu0 %668, %v85_v10  }
 0x15c   :  { %v59_v18 = vpop.permute.xlu0 %58 }
 0x15d   :  { %v61_v19 = vsel %vm782_vm3, %v59_v18, 0.0 }
 0x15e   :  { %v79_v22 = vsel %vm78_vm1, %v61_v19, %v76_v17 }
 0x15f   :  { %622 = vmatpush3.msra.mxu0 %v79_v22 }
 0x160   :  { %v72_v24 = vpop.permute.xlu1 %71  ;;  %624 = vmatmul.mubr.msk.f32.vlgmr.msra.gmra.mxu0 %vm91_vm4, %v84_v20  ;;  %633 = vmatprep.subr.mxu0 %v693_v2 }
 0x161   :  { %v74_v25 = vsel %vm794_vm5, %v72_v24, 0.0  ;;  %639 = vmatprep.mubr.msk.f32.mxu0 %vm694_vm2, %v693_v2 }
 0x162   :  { %627 = vmatpush3.msk.msra.mxu1 %vm78_vm1, %v74_v25 }
 0x163   :  { %628 = vmatprep.subr.mxu1 %v693_v2 }
 0x164   :  { %629 = vmatpush3.msra.mxu1 %v83_v26 }
 0x165   :  { %631 = vmatmul.mubr.msk.f32.vlgmr.msra.gmra.mxu1 %vm91_vm4, %v84_v20  ;;  %642 = vmatprep.subr.mxu1 %v693_v2 }
 0x166   :  { %648 = vmatprep.mubr.msk.f32.mxu1 %vm694_vm2, %v693_v2 }
 0x169   :  { %v89_v27 = vpop.permute.xlu0 %88 }
 0x220   :  { %v163_v28 = vpop.f32.mrf.mxu0 }
 0x221   :  { %v164_v29 = vadd.f32 %v163_v28, %v89_v27 }
 0x222   :  { %v625_v30 = vpop.f32.mrf.mxu0 }
 0x223   :  { %v240_v31 = vmax.f32 %v164_v29, 0.0 }
 0x225   :  { %v236_v32 = vpop.f32.mrf.mxu1  ;;  %253 = vrot.lane.b32.xlu1 %v240_v31, %s692_s29 }
 0x226   :  { %v237_v33 = vadd.f32 %v236_v32, %v89_v27 }
 0x227   :  { %v632_v34 = vpop.f32.mrf.mxu1 }
 0x228   :  { %v241_v35 = vmax.f32 %v237_v33, 0.0 }
 0x22a   :  { %634 = vmatpush3.msra.mxu0 %v241_v35  ;;  %242 = vrot.lane.b32.xlu1 %v241_v35, %s692_s29 }
 0x22b   :  { %635 = vmatprep.subr.mxu0 %v693_v2 }
 0x22c   :  { %636 = vmatpush3.msra.mxu0 %v240_v31 }
 0x22d   :  { %637 = vmatprep.subr.mxu0 %v693_v2 }
 0x297   :  { %v254_v36 = vpop.permute.xlu1 %253 }
 0x298   :  { %v255_v37 = vsel %vm48_vm0, %v254_v36, %v240_v31 }
 0x299   :  { %256 = vrot.lane.b32.xlu0 %v255_v37, %s692_s29 }
 0x29c   :  { %v243_v38 = vpop.permute.xlu1 %242 }
 0x29d   :  { %v244_v39 = vsel %vm48_vm0, %v243_v38, %v241_v35 }
 0x29e   :  { %245 = vrot.lane.b32.xlu1 %v244_v39, %s692_s29 }
 0x30b   :  { %v257_v40 = vpop.permute.xlu0 %256 }
 0x30c   :  { %v258_v41 = vsel %vm48_vm0, %v257_v40, %v240_v31 }
 0x30d   :  { %260 = vrot.lane.b32.xlu0 %v258_v41, %s697_s11 }
 0x310   :  { %v246_v43 = vpop.permute.xlu1 %245 }
 0x311   :  { %268 = vperm.xlu0 %668, %v265_v42   ;;  %v247_v44 = vsel %vm48_vm0, %v246_v43, %v241_v35 }
 0x312   :  { %249 = vrot.lane.b32.xlu1 %v247_v44, %s696_s0 }
 0x316   :  { %419 = vperm.xlu1 %669, %v416_v45  }
 0x37f   :  { %v261_v46 = vpop.permute.xlu0 %260 }
 0x380   :  { %643 = vmatpush3.msk.msra.mxu1 %vm794_vm5, %v261_v46 }
 0x381   :  { %644 = vmatprep.subr.mxu1 %v693_v2 }
 0x382   :  { %645 = vmatpush3.msra.mxu1 %v241_v35 }
 0x383   :  { %646 = vmatprep.subr.mxu1 %v693_v2 }
 0x384   :  { %647 = vmatpush3.msra.mxu1 %v240_v31  ;;  %v250_v48 = vpop.permute.xlu1 %249 }
 0x385   :  { %638 = vmatpush3.msk.msra.mxu0 %vm782_vm3, %v250_v48  ;;  %649 = vmatmul.mubr.msk.f32.vlgmr.msra.gmra.mxu1 %vm271_vm6, %v264_v47 }
 0x386   :  { %640 = vmatmul.mubr.msk.f32.vlgmr.msra.gmra.mxu0 %vm271_vm6, %v264_v47  ;;  %651 = vmatprep.subr.mxu0 %v693_v2 }
 0x387   :  { %656 = vmatprep.subr.mxu1 %v693_v2  ;;  %652 = vmatpush3.msk.msra.mxu0 %vm78_vm1, %v754_v1 }
 0x388   :  { %657 = vmatpush3.msk.msra.mxu1 %vm78_vm1, %v747_v0  ;;  %658 = vmatprep.mubr.msk.f32.mxu1 %vm694_vm2, %v693_v2 }
 0x389   :  { %653 = vmatprep.mubr.msk.f32.mxu0 %vm694_vm2, %v693_v2  ;;  %659 = vmatmul.mubr.msk.f32.vlgmr.msra.gmra.mxu1 %vm422_vm7, %v415_v49 }
 0x38a   :  { %654 = vmatmul.mubr.msk.f32.vlgmr.msra.gmra.mxu0 %vm422_vm7, %v415_v49 }
 0x38c   :  { %v269_v55 = vpop.permute.xlu0 %268 }
 0x391   :  { %v420_v53 = vpop.permute.xlu1 %419 }
 0x445   :  { %v411_v50 = vpop.f32.mrf.mxu1 }
 0x446   :  { %v341_v51 = vpop.f32.mrf.mxu0  ;;  %v412_v57 = vadd.f32 %v411_v50, %v269_v55 }
 0x447   :  { %v650_v52 = vpop.f32.mrf.mxu1  ;;  %v342_v60 = vadd.f32 %v341_v51, %v269_v55 }
 0x448   :  { %v641_v54 = vpop.f32.mrf.mxu0 }
 0x449   :  { %v564_v56 = vpop.f32.mrf.mxu1 }
 0x44a   :  { %v565_v58 = vadd.f32 %v564_v56, %v420_v53  ;;  %v494_v59 = vpop.f32.mrf.mxu0 }
 0x44b   :  { %v495_v61 = vadd.f32 %v494_v59, %v420_v53  ;;  %v660_v62 = vpop.f32.mrf.mxu1 }
 0x44c   :  { %v570_v63 = vadd.f32 %v565_v58, %v412_v57  ;;  %v655_v0 = vpop.f32.mrf.mxu0 }
 0x44d   :  { %v568_v1 = vadd.f32 %v495_v61, %v342_v60 }
 0x44e   :  { %v571_v3 = vmax.f32 %v570_v63, 0.0 }
 0x44f   :  { %v569_v2 = vmax.f32 %v568_v1, 0.0 }
 0x451   :  { %v572_v4 = vmax.f32 %v569_v2, %v571_v3 }
 0x453   :  { %574 = vst.msk [vmem:[#allocation2] sm:$0xff] %vm573_vm8, %v572_v4 }
 0x454   :  { %681 = shalt.err (!%p678_p4)
}
 0x455   :  { %584 = dma.vmem_to_hbm [thread:$0]  %s582_s6, 128, %s861_s8, [#allocation3]  }
 0x456   :  { %690 = dma.done.wait [#allocation3], 128  }
 0x457   :  { %691 = vsyncadd [#allocation3], 4294967168 }
 0x458   :  { %588 = vsyncpa [#allocation3], 1 }

</bundles_post_ra>
